<compile_context>
chip_gen: v6e
topology: v6e:2x2x1
jax: 0.10.0
libtpu: 0.0.40
codegen_flags: <defaults>
</compile_context>

<pallas_src>
import jax
import jax.numpy as jnp
from jax.experimental import pallas as pl
from jax.experimental.pallas import tpu as pltpu


def leo_kernel(
    sims_ref,                      # [T, 3]
    e1a_ref, e1b_ref,              # [T, H]
    e2a_ref, e2b_ref,              # [T, H]
    e3a_ref, e3b_ref,              # [T, F]
    Wd_ref, bd_ref,                # fused dim_reduc blockdiag(dW,dW) [2F, 2H], [1, 2H]
    W1_ref, b1_ref,                # block-diag [6H, 3H], [1, 3H]
    W2_ref, b2_ref,                # block-diag [3H, 3],  [1, 3]
    out_ref,                       # [T, 1]
):
    H = e1a_ref.shape[1]

    # --- dim_reduc on both halves of embedding3 as ONE matmul (blockdiag dW) ---
    # [e3a | e3b] @ blockdiag(dW, dW) == [e3a@dW | e3b@dW]  (exact: off-diag zeros)
    e3 = jnp.concatenate([e3a_ref[...], e3b_ref[...]], axis=1)           # [T, 2F]
    r = jnp.tanh(
        jnp.dot(e3, Wd_ref[...], preferred_element_type=jnp.float32) + bd_ref[...]
    )                                                                    # [T, 2H]
    r_a = r[:, :H]
    r_b = r[:, H:]

    e1a, e1b = e1a_ref[...], e1b_ref[...]
    e2a, e2b = e2a_ref[...], e2b_ref[...]

    # mean/max pooling for the three branches, packed into one [T, 6H] slab
    # (order matches the block-diagonal W1 row order built in _fuse_params).
    X = jnp.concatenate(
        [
            (e1a + e1b) * 0.5, jnp.maximum(e1a, e1b),
            (e2a + e2b) * 0.5, jnp.maximum(e2a, e2b),
            (r_a + r_b) * 0.5, jnp.maximum(r_a, r_b),
        ],
        axis=1,
    )

    # fused 2-layer MLP for all three branches via block-diagonal weights
    hid = jnp.tanh(
        jnp.dot(X, W1_ref[...], preferred_element_type=jnp.float32) + b1_ref[...]
    )                                                                    # [T, 3H]
    scores = jnp.tanh(
        jnp.dot(hid, W2_ref[...], preferred_element_type=jnp.float32) + b2_ref[...]
    )                                                                    # [T, 3]

    # softmax over the 3 branch scores fused with the similarity-weighted sum.
    # tanh bounds scores to (-1, 1) -> no max-shift needed (softmax is shift
    # invariant; exp stays in [1/e, e]).
    ex = jnp.exp(scores)                                                 # [T, 3]
    den = jnp.sum(ex, axis=-1, keepdims=True)                            # [T, 1]
    num = jnp.sum(sims_ref[...] * ex, axis=-1, keepdims=True)            # [T, 1]
    out_ref[...] = jax.nn.sigmoid(num * pl.reciprocal(den, approx=False))


def _round_up(x, m):
    return ((x + m - 1) // m) * m


def _block_diag(*blocks):
    rows = sum(b.shape[0] for b in blocks)
    cols = sum(b.shape[1] for b in blocks)
    out = jnp.zeros((rows, cols), jnp.float32)
    r = c = 0
    for b in blocks:
        out = out.at[r:r + b.shape[0], c:c + b.shape[1]].set(b.astype(jnp.float32))
        r += b.shape[0]
        c += b.shape[1]
    return out


def _fuse_params(p):
    # Off-diagonal blocks are exact zeros -> branches cannot leak into each other
    # and the fused matmuls are bit-equivalent to the per-branch ones.
    W1 = _block_diag(p["gW1"], p["sW1"], p["pW1"])                 # [6H, 3H]
    b1 = jnp.concatenate([p["gb1"], p["sb1"], p["pb1"]], axis=1)   # [1, 3H]
    W2 = _block_diag(p["gW2"], p["sW2"], p["pW2"])                 # [3H, 3]
    b2 = jnp.concatenate([p["gb2"], p["sb2"], p["pb2"]], axis=1)   # [1, 3]
    Wd = _block_diag(p["dW"], p["dW"])                             # [2F, 2H]
    bd = jnp.concatenate([p["db"], p["db"]], axis=1)               # [1, 2H]
    return W1, b1, W2, b2, Wd, bd


def leo_ensemble_forward(sims, emb1, emb2, emb3, params, *, tile_n=512):
    """sims: [N,3]; emb1/emb2: tuples of [N,H]; emb3: tuple of [N,F]."""
    N = sims.shape[0]
    H = emb1[0].shape[1]
    F = emb3[0].shape[1]

    W1, b1, W2, b2, Wd, bd = _fuse_params(params)

    # ---- tile / grid selection --------------------------------------------
    # Small N: a single step (splitting on single-TC v5e/v6e only adds the
    # ~0.35 us/step pipeline overhead).  Large N: target >= 4 steps of >= 256
    # rows so both v7x TensorCores get >= 2 steps and the BlockSpec
    # double-buffering can prefetch step i+1 while computing step i.
    n8 = _round_up(N, 8)
    tile = min(tile_n, n8)
    if n8 >= 4 * 256:
        tile = max(256, min(tile, _round_up(pl.cdiv(n8, 4), 8)))
    grid = pl.cdiv(N, tile)
    # VMEM: ~8 KiB per row (narrow blocks lane-pad to 128 in VMEM and are
    # double-buffered, plus X/hid intermediates) -> ~6 MiB at tile=512.

    f32 = lambda x: x.astype(jnp.float32)   # no-op copy when already f32

    row_spec = lambda cols: pl.BlockSpec((tile, cols), lambda i: (i, 0))
    full_spec = lambda r, c: pl.BlockSpec((r, c), lambda i: (0, 0))

    in_specs = [
        row_spec(3),
        row_spec(H), row_spec(H),
        row_spec(H), row_spec(H),
        row_spec(F), row_spec(F),
        full_spec(2 * F, 2 * H), full_spec(1, 2 * H),
        full_spec(6 * H, 3 * H), full_spec(1, 3 * H),
        full_spec(3 * H, 3), full_spec(1, 3),
    ]

    out = pl.pallas_call(
        leo_kernel,
        out_shape=jax.ShapeDtypeStruct((N, 1), jnp.float32),
        grid_spec=pltpu.PrefetchScalarGridSpec(
            num_scalar_prefetch=0,
            grid=(grid,),
            in_specs=in_specs,
            out_specs=pl.BlockSpec((tile, 1), lambda i: (i, 0)),
        ),
        compiler_params=pltpu.CompilerParams(
            dimension_semantics=("parallel",),
            vmem_limit_bytes=32 * 1024 * 1024,
        ),
    )(f32(sims),
      f32(emb1[0]), f32(emb1[1]),
      f32(emb2[0]), f32(emb2[1]),
      f32(emb3[0]), f32(emb3[1]),
      Wd, bd, W1, b1, W2, b2)
    return out[:, 0]


def _init_params(key, feat_dim, hidden_dim):
    ks = jax.random.split(key, 11)

    def lin(k, din, dout, scale=0.1):
        return jax.random.normal(k, (din, dout), jnp.float32) * scale

    params = {
        "gW1": lin(ks[0], 2 * hidden_dim, hidden_dim),
        "gb1": jnp.zeros((1, hidden_dim), jnp.float32),
        "gW2": lin(ks[1], hidden_dim, 1),
        "gb2": jnp.zeros((1, 1), jnp.float32),
        "sW1": lin(ks[2], 2 * hidden_dim, hidden_dim),
        "sb1": jnp.full((1, hidden_dim), 0.01, jnp.float32),
        "sW2": lin(ks[3], hidden_dim, 1),
        "sb2": jnp.full((1, 1), 0.02, jnp.float32),
        "pW1": lin(ks[4], 2 * hidden_dim, hidden_dim),
        "pb1": jnp.full((1, hidden_dim), -0.01, jnp.float32),
        "pW2": lin(ks[5], hidden_dim, 1),
        "pb2": jnp.full((1, 1), -0.02, jnp.float32),
        "dW": lin(ks[6], feat_dim, hidden_dim),
        "db": jnp.zeros((1, hidden_dim), jnp.float32),
    }
    return params


def _reference(sims, emb1, emb2, emb3, p):
    # pure-JAX reference matching the PyTorch forward (eval mode)
    def meanmax(a, b):
        return jnp.concatenate([(a + b) / 2.0, jnp.maximum(a, b)], axis=1)

    def branch(pooled, W1, b1, W2, b2):
        h = jnp.tanh(pooled @ W1 + b1)
        return jnp.tanh(h @ W2 + b2)

    e3a = jnp.tanh(emb3[0] @ p["dW"] + p["db"])
    e3b = jnp.tanh(emb3[1] @ p["dW"] + p["db"])
    s1 = branch(meanmax(*emb1), p["gW1"], p["gb1"], p["gW2"], p["gb2"])
    s2 = branch(meanmax(*emb2), p["sW1"], p["sb1"], p["sW2"], p["sb2"])
    s3 = branch(meanmax(e3a, e3b), p["pW1"], p["pb1"], p["pW2"], p["pb2"])
    scores = jnp.concatenate([s1, s2, s3], axis=1)
    attn = jax.nn.softmax(scores, axis=1)
    sim = jnp.sum(sims * attn, axis=1)
    return jax.nn.sigmoid(sim)


if __name__ == "__main__":
    N, hidden_dim, feat_dim = 16, 32, 64

    key = jax.random.PRNGKey(0)
    k_par, k_s, k1a, k1b, k2a, k2b, k3a, k3b = jax.random.split(key, 8)

    params = _init_params(k_par, feat_dim, hidden_dim)

    # `inputs` in the PyTorch module is a list of 3 similarity vectors -> vstack().T == [N, 3]
    sims = jax.random.uniform(k_s, (N, 3), jnp.float32)
    emb1 = (jax.random.normal(k1a, (N, hidden_dim), jnp.float32),
            jax.random.normal(k1b, (N, hidden_dim), jnp.float32))
    emb2 = (jax.random.normal(k2a, (N, hidden_dim), jnp.float32),
            jax.random.normal(k2b, (N, hidden_dim), jnp.float32))
    emb3 = (jax.random.normal(k3a, (N, feat_dim), jnp.float32),
            jax.random.normal(k3b, (N, feat_dim), jnp.float32))

    out = leo_ensemble_forward(sims, emb1, emb2, emb3, params)
    out = jax.block_until_ready(out)

    ref = _reference(sims, emb1, emb2, emb3, params)
    assert out.shape == (N,)
    assert jnp.allclose(out, ref, atol=1e-5, rtol=1e-5), (out, ref)

    print("KERNEL_OK")
</pallas_src>

<mosaic_0001>
module attributes {stable_mosaic.version = 11 : i64} {
  func.func @leo_kernel(%arg0: i32, %arg1: memref<16x3xf32, #tpu.memory_space<vmem>>, %arg2: memref<16x32xf32, #tpu.memory_space<vmem>>, %arg3: memref<16x32xf32, #tpu.memory_space<vmem>>, %arg4: memref<16x32xf32, #tpu.memory_space<vmem>>, %arg5: memref<16x32xf32, #tpu.memory_space<vmem>>, %arg6: memref<16x64xf32, #tpu.memory_space<vmem>>, %arg7: memref<16x64xf32, #tpu.memory_space<vmem>>, %arg8: memref<128x64xf32, #tpu.memory_space<vmem>>, %arg9: memref<1x64xf32, #tpu.memory_space<vmem>>, %arg10: memref<192x96xf32, #tpu.memory_space<vmem>>, %arg11: memref<1x96xf32, #tpu.memory_space<vmem>>, %arg12: memref<96x3xf32, #tpu.memory_space<vmem>>, %arg13: memref<1x3xf32, #tpu.memory_space<vmem>>, %arg14: memref<16x1xf32, #tpu.memory_space<vmem>>) attributes {dimension_semantics = [#tpu.dimension_semantics<parallel>], iteration_bounds = array<i64: 1>, scalar_prefetch = 0 : i64, scratch_operands = 0 : i64, tpu.core_type = #tpu.core_type<tc>, window_params = [{transform_indices = @transform_0, window_bounds = array<i64: 16, 3>}, {transform_indices = @transform_1, window_bounds = array<i64: 16, 32>}, {transform_indices = @transform_2, window_bounds = array<i64: 16, 32>}, {transform_indices = @transform_3, window_bounds = array<i64: 16, 32>}, {transform_indices = @transform_4, window_bounds = array<i64: 16, 32>}, {transform_indices = @transform_5, window_bounds = array<i64: 16, 64>}, {transform_indices = @transform_6, window_bounds = array<i64: 16, 64>}, {pipeline_mode = #tpu.pipeline_mode<synchronous>, transform_indices = @transform_7, window_bounds = array<i64: 128, 64>}, {pipeline_mode = #tpu.pipeline_mode<synchronous>, transform_indices = @transform_8, window_bounds = array<i64: 1, 64>}, {pipeline_mode = #tpu.pipeline_mode<synchronous>, transform_indices = @transform_9, window_bounds = array<i64: 192, 96>}, {pipeline_mode = #tpu.pipeline_mode<synchronous>, transform_indices = @transform_10, window_bounds = array<i64: 1, 96>}, {pipeline_mode = #tpu.pipeline_mode<synchronous>, transform_indices = @transform_11, window_bounds = array<i64: 96, 3>}, {pipeline_mode = #tpu.pipeline_mode<synchronous>, transform_indices = @transform_12, window_bounds = array<i64: 1, 3>}, {transform_indices = @transform_13, window_bounds = array<i64: 16, 1>}]} {
    %c0 = arith.constant 0 : index
    %c0_0 = arith.constant 0 : index
    %0 = vector.load %arg6[%c0, %c0_0] : memref<16x64xf32, #tpu.memory_space<vmem>>, vector<16x64xf32>
    %c0_1 = arith.constant 0 : index
    %c0_2 = arith.constant 0 : index
    %1 = vector.load %arg7[%c0_1, %c0_2] : memref<16x64xf32, #tpu.memory_space<vmem>>, vector<16x64xf32>
    %2 = tpu.concatenate %0, %1 in 1 : vector<16x64xf32>, vector<16x64xf32> -> vector<16x128xf32>
    %c0_3 = arith.constant 0 : index
    %c0_4 = arith.constant 0 : index
    %3 = vector.load %arg8[%c0_3, %c0_4] : memref<128x64xf32, #tpu.memory_space<vmem>>, vector<128x64xf32>
    %cst = arith.constant dense<0.000000e+00> : vector<16x64xf32>
    %4 = tpu.matmul %2, %3, %cst {dimension_numbers = #tpu.dot_dimension_numbers<[1], [0], [0], [1], [0, 0, 1, 1], [], []>} : vector<16x128xf32>, vector<128x64xf32>, vector<16x64xf32> -> vector<16x64xf32>
    %c0_5 = arith.constant 0 : index
    %c0_6 = arith.constant 0 : index
    %5 = vector.load %arg9[%c0_5, %c0_6] : memref<1x64xf32, #tpu.memory_space<vmem>>, vector<1x64xf32>
    %6 = vector.broadcast %5 : vector<1x64xf32> to vector<16x64xf32>
    %7 = arith.addf %4, %6 : vector<16x64xf32>
    %8 = math.tanh %7 : vector<16x64xf32>
    %9 = vector.extract_strided_slice %8 {offsets = [0, 0], sizes = [16, 32], strides = [1, 1]} : vector<16x64xf32> to vector<16x32xf32>
    %10 = vector.extract_strided_slice %8 {offsets = [0, 32], sizes = [16, 32], strides = [1, 1]} : vector<16x64xf32> to vector<16x32xf32>
    %c0_7 = arith.constant 0 : index
    %c0_8 = arith.constant 0 : index
    %11 = vector.load %arg2[%c0_7, %c0_8] : memref<16x32xf32, #tpu.memory_space<vmem>>, vector<16x32xf32>
    %c0_9 = arith.constant 0 : index
    %c0_10 = arith.constant 0 : index
    %12 = vector.load %arg3[%c0_9, %c0_10] : memref<16x32xf32, #tpu.memory_space<vmem>>, vector<16x32xf32>
    %c0_11 = arith.constant 0 : index
    %c0_12 = arith.constant 0 : index
    %13 = vector.load %arg4[%c0_11, %c0_12] : memref<16x32xf32, #tpu.memory_space<vmem>>, vector<16x32xf32>
    %c0_13 = arith.constant 0 : index
    %c0_14 = arith.constant 0 : index
    %14 = vector.load %arg5[%c0_13, %c0_14] : memref<16x32xf32, #tpu.memory_space<vmem>>, vector<16x32xf32>
    %15 = arith.addf %11, %12 : vector<16x32xf32>
    %cst_15 = arith.constant 5.000000e-01 : f32
    %16 = vector.broadcast %cst_15 : f32 to vector<16x32xf32>
    %17 = arith.mulf %15, %16 : vector<16x32xf32>
    %18 = arith.maximumf %11, %12 : vector<16x32xf32>
    %19 = arith.addf %13, %14 : vector<16x32xf32>
    %cst_16 = arith.constant 5.000000e-01 : f32
    %20 = vector.broadcast %cst_16 : f32 to vector<16x32xf32>
    %21 = arith.mulf %19, %20 : vector<16x32xf32>
    %22 = arith.maximumf %13, %14 : vector<16x32xf32>
    %23 = arith.addf %9, %10 : vector<16x32xf32>
    %cst_17 = arith.constant 5.000000e-01 : f32
    %24 = vector.broadcast %cst_17 : f32 to vector<16x32xf32>
    %25 = arith.mulf %23, %24 : vector<16x32xf32>
    %26 = arith.maximumf %9, %10 : vector<16x32xf32>
    %27 = tpu.concatenate %17, %18, %21, %22, %25, %26 in 1 : vector<16x32xf32>, vector<16x32xf32>, vector<16x32xf32>, vector<16x32xf32>, vector<16x32xf32>, vector<16x32xf32> -> vector<16x192xf32>
    %c0_18 = arith.constant 0 : index
    %c0_19 = arith.constant 0 : index
    %28 = vector.load %arg10[%c0_18, %c0_19] : memref<192x96xf32, #tpu.memory_space<vmem>>, vector<192x96xf32>
    %cst_20 = arith.constant dense<0.000000e+00> : vector<16x96xf32>
    %29 = tpu.matmul %27, %28, %cst_20 {dimension_numbers = #tpu.dot_dimension_numbers<[1], [0], [0], [1], [0, 0, 1, 1], [], []>} : vector<16x192xf32>, vector<192x96xf32>, vector<16x96xf32> -> vector<16x96xf32>
    %c0_21 = arith.constant 0 : index
    %c0_22 = arith.constant 0 : index
    %30 = vector.load %arg11[%c0_21, %c0_22] : memref<1x96xf32, #tpu.memory_space<vmem>>, vector<1x96xf32>
    %31 = vector.broadcast %30 : vector<1x96xf32> to vector<16x96xf32>
    %32 = arith.addf %29, %31 : vector<16x96xf32>
    %33 = math.tanh %32 : vector<16x96xf32>
    %c0_23 = arith.constant 0 : index
    %c0_24 = arith.constant 0 : index
    %34 = vector.load %arg12[%c0_23, %c0_24] : memref<96x3xf32, #tpu.memory_space<vmem>>, vector<96x3xf32>
    %cst_25 = arith.constant dense<0.000000e+00> : vector<16x3xf32>
    %35 = tpu.matmul %33, %34, %cst_25 {dimension_numbers = #tpu.dot_dimension_numbers<[1], [0], [0], [1], [0, 0, 1, 1], [], []>} : vector<16x96xf32>, vector<96x3xf32>, vector<16x3xf32> -> vector<16x3xf32>
    %c0_26 = arith.constant 0 : index
    %c0_27 = arith.constant 0 : index
    %36 = vector.load %arg13[%c0_26, %c0_27] : memref<1x3xf32, #tpu.memory_space<vmem>>, vector<1x3xf32>
    %37 = vector.broadcast %36 : vector<1x3xf32> to vector<16x3xf32>
    %38 = arith.addf %35, %37 : vector<16x3xf32>
    %39 = math.tanh %38 : vector<16x3xf32>
    %40 = math.exp %39 : vector<16x3xf32>
    %cst_28 = arith.constant dense<0.000000e+00> : vector<16xf32>
    %41 = vector.multi_reduction <add>, %40, %cst_28 [1] : vector<16x3xf32> to vector<16xf32>
    %42 = vector.shape_cast %41 : vector<16xf32> to vector<16x1xf32>
    %c0_29 = arith.constant 0 : index
    %c0_30 = arith.constant 0 : index
    %43 = vector.load %arg1[%c0_29, %c0_30] : memref<16x3xf32, #tpu.memory_space<vmem>>, vector<16x3xf32>
    %44 = arith.mulf %43, %40 : vector<16x3xf32>
    %cst_31 = arith.constant dense<0.000000e+00> : vector<16xf32>
    %45 = vector.multi_reduction <add>, %44, %cst_31 [1] : vector<16x3xf32> to vector<16xf32>
    %46 = vector.shape_cast %45 : vector<16xf32> to vector<16x1xf32>
    %47 = tpu.reciprocal %42 : vector<16x1xf32> -> vector<16x1xf32>
    %48 = arith.mulf %46, %47 : vector<16x1xf32>
    %49 = arith.negf %48 : vector<16x1xf32>
    %50 = math.exp %49 : vector<16x1xf32>
    %cst_32 = arith.constant 1.000000e+00 : f32
    %51 = vector.broadcast %cst_32 : f32 to vector<16x1xf32>
    %52 = arith.addf %51, %50 : vector<16x1xf32>
    %53 = arith.divf %51, %52 : vector<16x1xf32>
    %c0_33 = arith.constant 0 : index
    %c0_34 = arith.constant 0 : index
    %54 = vector.load %arg14[%c0_33, %c0_34] : memref<16x1xf32, #tpu.memory_space<vmem>>, vector<16x1xf32>
    tpu.vector_store %arg14[%c0_33, %c0_34], %53 {strides = array<i32>} : memref<16x1xf32, #tpu.memory_space<vmem>>, vector<16x1xf32>,
    return
  }
  func.func @transform_0(%arg0: i32) -> (i32, i32) {
    %c0_i32 = arith.constant 0 : i32
    %c0_i32_0 = arith.constant 0 : i32
    return %arg0, %c0_i32 : i32, i32
  }
  func.func @transform_1(%arg0: i32) -> (i32, i32) {
    %c0_i32 = arith.constant 0 : i32
    %c0_i32_0 = arith.constant 0 : i32
    return %arg0, %c0_i32 : i32, i32
  }
  func.func @transform_2(%arg0: i32) -> (i32, i32) {
    %c0_i32 = arith.constant 0 : i32
    %c0_i32_0 = arith.constant 0 : i32
    return %arg0, %c0_i32 : i32, i32
  }
  func.func @transform_3(%arg0: i32) -> (i32, i32) {
    %c0_i32 = arith.constant 0 : i32
    %c0_i32_0 = arith.constant 0 : i32
    return %arg0, %c0_i32 : i32, i32
  }
  func.func @transform_4(%arg0: i32) -> (i32, i32) {
    %c0_i32 = arith.constant 0 : i32
    %c0_i32_0 = arith.constant 0 : i32
    return %arg0, %c0_i32 : i32, i32
  }
  func.func @transform_5(%arg0: i32) -> (i32, i32) {
    %c0_i32 = arith.constant 0 : i32
    %c0_i32_0 = arith.constant 0 : i32
    return %arg0, %c0_i32 : i32, i32
  }
  func.func @transform_6(%arg0: i32) -> (i32, i32) {
    %c0_i32 = arith.constant 0 : i32
    %c0_i32_0 = arith.constant 0 : i32
    return %arg0, %c0_i32 : i32, i32
  }
  func.func @transform_7(%arg0: i32) -> (i32, i32) {
    %c0_i32 = arith.constant 0 : i32
    %c0_i32_0 = arith.constant 0 : i32
    %c0_i32_1 = arith.constant 0 : i32
    return %c0_i32, %c0_i32_0 : i32, i32
  }
  func.func @transform_8(%arg0: i32) -> (i32, i32) {
    %c0_i32 = arith.constant 0 : i32
    %c0_i32_0 = arith.constant 0 : i32
    %c0_i32_1 = arith.constant 0 : i32
    return %c0_i32, %c0_i32_0 : i32, i32
  }
  func.func @transform_9(%arg0: i32) -> (i32, i32) {
    %c0_i32 = arith.constant 0 : i32
    %c0_i32_0 = arith.constant 0 : i32
    %c0_i32_1 = arith.constant 0 : i32
    return %c0_i32, %c0_i32_0 : i32, i32
  }
  func.func @transform_10(%arg0: i32) -> (i32, i32) {
    %c0_i32 = arith.constant 0 : i32
    %c0_i32_0 = arith.constant 0 : i32
    %c0_i32_1 = arith.constant 0 : i32
    return %c0_i32, %c0_i32_0 : i32, i32
  }
  func.func @transform_11(%arg0: i32) -> (i32, i32) {
    %c0_i32 = arith.constant 0 : i32
    %c0_i32_0 = arith.constant 0 : i32
    %c0_i32_1 = arith.constant 0 : i32
    return %c0_i32, %c0_i32_0 : i32, i32
  }
  func.func @transform_12(%arg0: i32) -> (i32, i32) {
    %c0_i32 = arith.constant 0 : i32
    %c0_i32_0 = arith.constant 0 : i32
    %c0_i32_1 = arith.constant 0 : i32
    return %c0_i32, %c0_i32_0 : i32, i32
  }
  func.func @transform_13(%arg0: i32) -> (i32, i32) {
    %c0_i32 = arith.constant 0 : i32
    %c0_i32_0 = arith.constant 0 : i32
    return %arg0, %c0_i32 : i32, i32
  }
}

</mosaic_0001>

<bundles_post_ra>
// kernel: tpu_custom_call.1
= control target key start
LH: loop header
LB: loop body
LE: loop exit
PB: predicated region body
PF: predicated region fallthrough
CT: control target
= control target key end

     0   :  { %s645_s18 = smov 64   ;;  %vm56_vm0 = vcmask 523264   ;;  %v646_v45 = vmov 0.0   ;;  %s648_s17 = smov 32   ;;  %vm225_vm1 = vcmask 261120   ;;  %vm230_vm2 = vcmask 785408   ;;  %s995_s6 = inlined_call_operand.vmem [shape: f32[16,64], index: 6, kind: input, shape index: {}]   ;;  %s996_s7 = inlined_call_operand.vmem [shape: f32[128,64], index: 7, kind: input, shape index: {}]   ;;  %s997_s5 = inlined_call_operand.vmem [shape: f32[16,64], index: 5, kind: input, shape index: {}]   ;;  %s998_s8 = inlined_call_operand.vmem [shape: f32[1,64], index: 8, kind: input, shape index: {}]   ;;  %s999_s1 = inlined_call_operand.vmem [shape: f32[16,32], index: 1, kind: input, shape index: {}]   ;;  %s1000_s2 = inlined_call_operand.vmem [shape: f32[16,32], index: 2, kind: input, shape index: {}]   ;;  %s1001_s3 = inlined_call_operand.vmem [shape: f32[16,32], index: 3, kind: input, shape index: {}]   ;;  %s1002_s4 = inlined_call_operand.vmem [shape: f32[16,32], index: 4, kind: input, shape index: {}]   ;;  %s1003_s9 = inlined_call_operand.vmem [shape: f32[192,96], index: 9, kind: input, shape index: {}]   ;;  %s1004_s11 = inlined_call_operand.vmem [shape: f32[96,3], index: 11, kind: input, shape index: {}]   ;;  %s1005_s10 = inlined_call_operand.vmem [shape: f32[1,96], index: 10, kind: input, shape index: {}]   ;;  %s1006_s12 = inlined_call_operand.vmem [shape: f32[1,3], index: 12, kind: input, shape index: {}]   ;;  %s1007_s0 = inlined_call_operand.vmem [shape: f32[16,3], index: 0, kind: input, shape index: {}]   ;;  %s1008_s13 = inlined_call_operand.vmem [shape: f32[16,1], index: 13, kind: output, shape index: {}]  }
   0x1   :  { %v46_v0 = vld [vmem:[%s995_s6] sm:$0xff]  ;;  %v47_v1 = vld [vmem:[%s995_s6 + $0x8] sm:$0xff]  ;;  %v74_v2 = vld [vmem:[%s996_s7 + $0x78] sm:$0xff]  ;;  %272 = vmatprep.subr.mxu1 %v646_v45  ;;  %vm455_vm3 = vcmask 23552   ;;  %vm488_vm4 = vcmask 7168  }
   0x2   :  { %v602_v3 = vpack.i.bf16 %v47_v1, %v46_v0  ;;  %536 = vmatprep.subr.mxu0 %v74_v2  ;;  %v73_v4 = vld [vmem:[%s996_s7 + $0x70] sm:$0xff]  ;;  %v72_v5 = vld [vmem:[%s996_s7 + $0x68] sm:$0xff]  ;;  %v71_v6 = vld [vmem:[%s996_s7 + $0x60] sm:$0xff] }
   0x3   :  { %537 = vmatpush3.msra.mxu0 %v74_v2  ;;  %v70_v7 = vld [vmem:[%s996_s7 + $0x58] sm:$0xff]  ;;  %v69_v8 = vld [vmem:[%s996_s7 + $0x50] sm:$0xff]  ;;  %v68_v9 = vld [vmem:[%s996_s7 + $0x48] sm:$0xff] }
   0x4   :  { %603 = vrot.lane.b32.xlu0 %v602_v3, %s645_s18  ;;  %538 = vmatprep.subr.mxu0 %v73_v4  ;;  %v67_v10 = vld [vmem:[%s996_s7 + $0x40] sm:$0xff]  ;;  %v66_v11 = vld [vmem:[%s996_s7 + $0x38] sm:$0xff]  ;;  %v65_v12 = vld [vmem:[%s996_s7 + $0x30] sm:$0xff] }
   0x5   :  { %539 = vmatpush3.msra.mxu0 %v73_v4  ;;  %v64_v13 = vld [vmem:[%s996_s7 + $0x28] sm:$0xff]  ;;  %v63_v14 = vld [vmem:[%s996_s7 + $0x20] sm:$0xff]  ;;  %v62_v15 = vld [vmem:[%s996_s7 + $0x18] sm:$0xff] }
   0x6   :  { %540 = vmatprep.subr.mxu0 %v72_v5  ;;  %v61_v16 = vld [vmem:[%s996_s7 + $0x10] sm:$0xff]  ;;  %v60_v17 = vld [vmem:[%s996_s7 + $0x8] sm:$0xff]  ;;  %v59_v18 = vld [vmem:[%s996_s7] sm:$0xff]  ;;  %s647_s7 = smov 96  }
   0x7   :  { %541 = vmatpush3.msra.mxu0 %v72_v5  ;;  %v44_v20 = vld [vmem:[%s997_s5] sm:$0xff]  ;;  %v45_v21 = vld [vmem:[%s997_s5 + $0x8] sm:$0xff]  ;;  %v250_v46 = vld [vmem:[%s1003_s9 + $0x78] sm:$0xff] }
   0x8   :  { %542 = vmatprep.subr.mxu0 %v71_v6  ;;  %v495_v26 = vld [vmem:[%s998_s8] ss:$0 sm:$0xff]  ;;  %v160_v32 = vld [vmem:[%s999_s1 + $0x8] sm:$0xff]  ;;  %v249_v47 = vld [vmem:[%s1003_s9 + $0x70] sm:$0xff]  ;;  %273 = vmatpush1.msra.mxu1 %v250_v46 }
   0x9   :  { %543 = vmatpush3.msra.mxu0 %v71_v6  ;;  %v159_v31 = vld [vmem:[%s999_s1] sm:$0xff]  ;;  %v162_v34 = vld [vmem:[%s1000_s2 + $0x8] sm:$0xff]  ;;  %274 = vmatprep.subr.mxu1 %v646_v45  ;;  %v246_v56 = vld [vmem:[%s1003_s9 + $0x58] sm:$0xff] }
   0xa   :  { %544 = vmatprep.subr.mxu0 %v70_v7  ;;  %v161_v33 = vld [vmem:[%s1000_s2] sm:$0xff]  ;;  %v797_v35 = vadd.f32 %v162_v34, %v160_v32  ;;  %v164_v38 = vld [vmem:[%s1001_s3 + $0x8] sm:$0xff]  ;;  %v172_v44 = vmax.f32 %v160_v32, %v162_v34  ;;  %275 = vmatpush1.msra.mxu1 %v249_v47  ;;  %v245_v57 = vld [vmem:[%s1003_s9 + $0x50] sm:$0xff] }
   0xb   :  { %545 = vmatpush3.msra.mxu0 %v70_v7  ;;  %v799_v36 = vadd.f32 %v161_v33, %v159_v31  ;;  %v163_v37 = vld [vmem:[%s1001_s3] sm:$0xff]  ;;  %v166_v40 = vld [vmem:[%s1002_s4 + $0x8] sm:$0xff]  ;;  %v171_v43 = vmax.f32 %v159_v31, %v161_v33  ;;  %276 = vmatprep.subr.mxu1 %v646_v45  ;;  %v242_v62 = vld [vmem:[%s1003_s9 + $0x38] sm:$0xff] }
   0xc   :  { %546 = vmatprep.subr.mxu0 %v69_v8  ;;  %v165_v39 = vld [vmem:[%s1002_s4] sm:$0xff]  ;;  %v174_v42 = vadd.f32 %v166_v40, %v164_v38  ;;  %v248_v50 = vld [vmem:[%s1003_s9 + $0x68] sm:$0xff]  ;;  %v178_v61 = vmax.f32 %v164_v38, %v166_v40  ;;  %v241_v63 = vld [vmem:[%s1003_s9 + $0x30] sm:$0xff] }
   0xd   :  { %547 = vmatpush3.msra.mxu0 %v69_v8  ;;  %v173_v41 = vadd.f32 %v165_v39, %v163_v37  ;;  %v607_v52 = vpack.i.bf16 %v172_v44, %v171_v43  ;;  %v247_v53 = vld [vmem:[%s1003_s9 + $0x60] sm:$0xff]  ;;  %277 = vmatpush1.msra.mxu1 %v248_v50  ;;  %v177_v58 = vmax.f32 %v163_v37, %v165_v39  ;;  %v244_v59 = vld [vmem:[%s1003_s9 + $0x48] sm:$0xff]  ;;  %v238_v2 = vld [vmem:[%s1003_s9 + $0x18] sm:$0xff] }
   0xe   :  { %548 = vmatprep.subr.mxu0 %v68_v9  ;;  %v176_v49 = vmul.f32 0.5, %v174_v42  ;;  %278 = vmatprep.subr.mxu1 %v646_v45  ;;  %v243_v60 = vld [vmem:[%s1003_s9 + $0x40] sm:$0xff]  ;;  %v240_v0 = vld [vmem:[%s1003_s9 + $0x28] sm:$0xff]  ;;  %v237_v3 = vld [vmem:[%s1003_s9 + $0x10] sm:$0xff] }
   0xf   :  { %549 = vmatpush3.msra.mxu0 %v68_v9  ;;  %v175_v48 = vmul.f32 0.5, %v173_v41  ;;  %279 = vmatpush1.msra.mxu1 %v247_v53  ;;  %v239_v1 = vld [vmem:[%s1003_s9 + $0x20] sm:$0xff]  ;;  %v236_v4 = vld [vmem:[%s1003_s9 + $0x8] sm:$0xff]  ;;  %v258_v6 = vld [vmem:[%s1003_s9 + $0xb8] sm:$0xff] }
  0x10   :  { %550 = vmatprep.subr.mxu0 %v67_v10  ;;  %280 = vmatprep.subr.mxu1 %v646_v45  ;;  %v235_v5 = vld [vmem:[%s1003_s9] sm:$0xff]  ;;  %v257_v7 = vld [vmem:[%s1003_s9 + $0xb0] sm:$0xff]  ;;  %v256_v8 = vld [vmem:[%s1003_s9 + $0xa8] sm:$0xff] }
  0x11   :  { %551 = vmatpush3.msra.mxu0 %v67_v10  ;;  %v612_v55 = vpack.i.bf16 %v176_v49, %v175_v48  ;;  %281 = vmatpush1.msra.mxu1 %v246_v56  ;;  %v255_v9 = vld [vmem:[%s1003_s9 + $0xa0] sm:$0xff]  ;;  %v254_v10 = vld [vmem:[%s1003_s9 + $0x98] sm:$0xff]  ;;  %v358_v44 = vld [vmem:[%s1004_s11 + $0x48] sm:$0xff] }
  0x12   :  { %552 = vmatprep.subr.mxu0 %v66_v11  ;;  %282 = vmatprep.subr.mxu1 %v646_v45  ;;  %v356_v46 = vld [vmem:[%s1004_s11 + $0x38] sm:$0xff]  ;;  %v355_v47 = vld [vmem:[%s1004_s11 + $0x30] sm:$0xff]  ;;  %v354_v48 = vld [vmem:[%s1004_s11 + $0x28] sm:$0xff] }
  0x13   :  { %553 = vmatpush3.msra.mxu0 %v66_v11  ;;  %283 = vmatpush1.msra.mxu1 %v245_v57  ;;  %v253_v11 = vld [vmem:[%s1003_s9 + $0x90] sm:$0xff]  ;;  %v353_v49 = vld [vmem:[%s1004_s11 + $0x20] sm:$0xff]  ;;  %v352_v50 = vld [vmem:[%s1004_s11 + $0x18] sm:$0xff] }
  0x14   :  { %554 = vmatprep.subr.mxu0 %v65_v12  ;;  %284 = vmatprep.subr.mxu1 %v646_v45  ;;  %v349_v53 = vld [vmem:[%s1004_s11] sm:$0xff] }
  0x15   :  { %555 = vmatpush3.msra.mxu0 %v65_v12  ;;  %285 = vmatpush1.msra.mxu1 %v244_v59  ;;  %v252_v12 = vld [vmem:[%s1003_s9 + $0x88] sm:$0xff] }
  0x16   :  { %556 = vmatprep.subr.mxu0 %v64_v13  ;;  %286 = vmatprep.subr.mxu1 %v646_v45 }
  0x17   :  { %557 = vmatpush3.msra.mxu0 %v64_v13  ;;  %287 = vmatpush1.msra.mxu1 %v243_v60  ;;  %v251_v13 = vld [vmem:[%s1003_s9 + $0x80] sm:$0xff] }
  0x18   :  { %558 = vmatprep.subr.mxu0 %v63_v14  ;;  %288 = vmatprep.subr.mxu1 %v646_v45 }
  0x19   :  { %559 = vmatpush3.msra.mxu0 %v63_v14  ;;  %289 = vmatpush1.msra.mxu1 %v242_v62  ;;  %v360_v14 = vld [vmem:[%s1004_s11 + $0x58] sm:$0xff] }
  0x1a   :  { %560 = vmatprep.subr.mxu0 %v62_v15  ;;  %290 = vmatprep.subr.mxu1 %v646_v45 }
  0x1b   :  { %561 = vmatpush3.msra.mxu0 %v62_v15  ;;  %291 = vmatpush1.msra.mxu1 %v241_v63  ;;  %v359_v15 = vld [vmem:[%s1004_s11 + $0x50] sm:$0xff]  ;;  %v499_v63 = vld [vmem:[%s1006_s12] ss:$0 sm:$0xff] }
  0x1c   :  { %562 = vmatprep.subr.mxu0 %v61_v16  ;;  %292 = vmatprep.subr.mxu1 %v646_v45 }
  0x1d   :  { %563 = vmatpush3.msra.mxu0 %v61_v16  ;;  %293 = vmatpush1.msra.mxu1 %v240_v0 }
  0x1e   :  { %564 = vmatprep.subr.mxu0 %v60_v17  ;;  %294 = vmatprep.subr.mxu1 %v646_v45 }
  0x1f   :  { %565 = vmatpush3.msra.mxu0 %v60_v17  ;;  %295 = vmatpush1.msra.mxu1 %v239_v1 }
  0x20   :  { %566 = vmatprep.subr.mxu0 %v59_v18  ;;  %296 = vmatprep.subr.mxu1 %v646_v45 }
  0x21   :  { %567 = vmatpush3.msra.mxu0 %v59_v18  ;;  %297 = vmatpush1.msra.mxu1 %v238_v2 }
  0x22   :  { %298 = vmatprep.subr.mxu1 %v646_v45  ;;  %571 = vmatprep.subr.mxu0 %v360_v14 }
  0x23   :  { %299 = vmatpush1.msra.mxu1 %v237_v3 }
  0x24   :  { %300 = vmatprep.subr.mxu1 %v646_v45 }
  0x25   :  { %301 = vmatpush1.msra.mxu1 %v236_v4 }
  0x26   :  { %302 = vmatprep.subr.mxu1 %v646_v45 }
  0x27   :  { %303 = vmatpush1.msra.mxu1 %v235_v5 }
  0x28   :  { %320 = vmatprep.subr.mxu1 %v646_v45 }
  0x29   :  { %321 = vmatpush2.msra.mxu1 %v258_v6 }
  0x2a   :  { %322 = vmatprep.subr.mxu1 %v646_v45 }
  0x2b   :  { %323 = vmatpush2.msra.mxu1 %v257_v7 }
  0x2c   :  { %324 = vmatprep.subr.mxu1 %v646_v45 }
  0x2d   :  { %325 = vmatpush2.msra.mxu1 %v256_v8 }
  0x2e   :  { %326 = vmatprep.subr.mxu1 %v646_v45 }
  0x2f   :  { %327 = vmatpush2.msra.mxu1 %v255_v9  ;;  %v462_v9 = vld [vmem:[%s1007_s0] sm:$0xff] }
  0x30   :  { %328 = vmatprep.subr.mxu1 %v646_v45 }
  0x31   :  { %329 = vmatpush2.msra.mxu1 %v254_v10  ;;  %v463_v10 = vld [vmem:[%s1007_s0 + $0x8] sm:$0xff] }
  0x32   :  { %330 = vmatprep.subr.mxu1 %v646_v45 }
  0x33   :  { %331 = vmatpush2.msra.mxu1 %v253_v11 }
  0x34   :  { %332 = vmatprep.subr.mxu1 %v646_v45 }
  0x35   :  { %333 = vmatpush2.msra.mxu1 %v252_v12 }
  0x36   :  { %334 = vmatprep.subr.mxu1 %v646_v45  ;;  %v357_v45 = vld [vmem:[%s1004_s11 + $0x40] sm:$0xff] }
  0x37   :  { %335 = vmatpush2.msra.mxu1 %v251_v13 }
  0x76   :  { %v604_v19 = vpop.permute.xlu0 %603 }
  0x77   :  { %v606_v22 = vunpack.i.h.bf16 %v604_v19  ;;  %v605_v23 = vunpack.i.l.bf16 %v604_v19 }
  0x79   :  { %v57_v24 = vsel %vm56_vm0, %v44_v20, %v605_v23  ;;  %v58_v25 = vsel %vm56_vm0, %v45_v21, %v606_v22  ;;  %v169_v21 = vmul.f32 0.5, %v799_v36 }
  0x7a   :  { %568 = vmatprep.mubr.f32.mxu0 %v57_v24 }
  0x7b   :  { %569 = vmatmul.mubr.f32.vlgmr.msra.gmra.mxu0 %v58_v25 }
  0x7c   :  { %572 = vmatpush3.msra.mxu0 %v360_v14 }
  0x7d   :  { %573 = vmatprep.subr.mxu0 %v359_v15 }
  0x7e   :  { %574 = vmatpush3.msra.mxu0 %v359_v15 }
  0x7f   :  { %575 = vmatprep.subr.mxu0 %v358_v44 }
  0x80   :  { %576 = vmatpush3.msra.mxu0 %v358_v44 }
  0x81   :  { %577 = vmatprep.subr.mxu0 %v357_v45 }
  0x82   :  { %578 = vmatpush3.msra.mxu0 %v357_v45 }
  0x83   :  { %579 = vmatprep.subr.mxu0 %v356_v46 }
  0x84   :  { %580 = vmatpush3.msra.mxu0 %v356_v46 }
  0x85   :  { %581 = vmatprep.subr.mxu0 %v355_v47 }
  0x86   :  { %582 = vmatpush3.msra.mxu0 %v355_v47 }
  0x87   :  { %583 = vmatprep.subr.mxu0 %v354_v48 }
  0x88   :  { %584 = vmatpush3.msra.mxu0 %v354_v48 }
  0x89   :  { %585 = vmatprep.subr.mxu0 %v353_v49 }
  0x8a   :  { %586 = vmatpush3.msra.mxu0 %v353_v49 }
  0x8b   :  { %587 = vmatprep.subr.mxu0 %v352_v50 }
  0x8c   :  { %588 = vmatpush3.msra.mxu0 %v352_v50 }
 0x13b   :  { %v570_v27 = vpop.f32.mrf.mxu0 }
 0x13c   :  { %v154_v28 = vadd.f32 %v570_v27, %v495_v26  ;;  %v170_v27 = vmul.f32 0.5, %v797_v35 }
 0x13d   :  { %v148_v29 = vpop.f32.mrf.mxu0 }
 0x13e   :  { %617 = vtanh.f32 %v154_v28  ;;  %v149_v30 = vadd.f32 %v495_v26, %v148_v29 }
 0x140   :  { %619 = vtanh.f32 %v149_v30 }
 0x14b   :  { %v824_v51 = vpop.eup %617 }
 0x14c   :  { %183 = vrot.lane.b32.xlu1 %v824_v51, %s647_s7 }
 0x14d   :  { %v832_v54 = vpop.eup %619 }
 0x14e   :  { %181 = vrot.lane.b32.xlu0 %v832_v54, %s647_s7 }
 0x150   :  { %608 = vrot.lane.b32.xlu1 %v607_v52, %s648_s17  ;;  %v350_v52 = vld [vmem:[%s1004_s11 + $0x8] sm:$0xff] }
 0x152   :  { %613 = vrot.lane.b32.xlu0 %v612_v55, %s645_s18 }
 0x156   :  { %211 = vrot.lane.b32.xlu0 %v177_v58, %s647_s7 }
 0x15a   :  { %213 = vrot.lane.b32.xlu0 %v178_v61, %s647_s7 }
 0x1be   :  { %v184_v18 = vpop.permute.xlu1 %183 }
 0x1bf   :  { %v192_v19 = vmax.f32 %v824_v51, %v184_v18  ;;  %v188_v31 = vadd.f32 %v824_v51, %v184_v18  ;;  %v351_v51 = vld [vmem:[%s1004_s11 + $0x10] sm:$0xff] }
 0x1c0   :  { %v182_v16 = vpop.permute.xlu0 %181  ;;  %589 = vmatprep.subr.mxu0 %v351_v51 }
 0x1c1   :  { %v191_v17 = vmax.f32 %v832_v54, %v182_v16  ;;  %v187_v26 = vadd.f32 %v832_v54, %v182_v16  ;;  %v190_v39 = vmul.f32 0.5, %v188_v31  ;;  %590 = vmatpush3.msra.mxu0 %v351_v51  ;;  %v496_v54 = vld [vmem:[%s1005_s10] ss:$0 sm:$0xff] }
 0x1c2   :  { %v609_v20 = vpop.permute.xlu1 %608  ;;  %591 = vmatprep.subr.mxu0 %v350_v52 }
 0x1c3   :  { %219 = vrot.lane.b32.xlu1 %v191_v17, %s648_s17  ;;  %v610_v22 = vunpack.i.l.bf16 %v609_v20  ;;  %v611_v28 = vunpack.i.h.bf16 %v609_v20  ;;  %v189_v32 = vmul.f32 0.5, %v187_v26  ;;  %592 = vmatpush3.msra.mxu0 %v350_v52 }
 0x1c4   :  { %v614_v23 = vpop.permute.xlu0 %613  ;;  %593 = vmatprep.subr.mxu0 %v349_v53 }
 0x1c5   :  { %v615_v24 = vunpack.i.l.bf16 %v614_v23  ;;  %v226_v25 = vsel %vm225_vm1, %v169_v21, %v610_v22  ;;  %v616_v33 = vunpack.i.h.bf16 %v614_v23  ;;  %v227_v37 = vsel %vm225_vm1, %v170_v27, %v611_v28  ;;  %594 = vmatpush3.msra.mxu0 %v349_v53 }
 0x1c7   :  { %221 = vrot.lane.b32.xlu1 %v192_v19, %s648_s17  ;;  %v228_v30 = vsel %vm56_vm0, %v226_v25, %v615_v24  ;;  %v229_v40 = vsel %vm56_vm0, %v227_v37, %v616_v33 }
 0x1c8   :  { %v212_v29 = vpop.permute.xlu0 %211 }
 0x1c9   :  { %v231_v36 = vsel %vm230_vm2, %v228_v30, %v212_v29 }
 0x1cc   :  { %v214_v35 = vpop.permute.xlu0 %213 }
 0x1cd   :  { %v232_v43 = vsel %vm230_vm2, %v229_v40, %v214_v35 }
 0x235   :  { %v220_v34 = vpop.permute.xlu1 %219 }
 0x236   :  { %v233_v38 = vsel %vm225_vm1, %v189_v32, %v220_v34 }
 0x237   :  { %497 = vmatprep.mubr.msk.f32.mxu1 %vm56_vm0, %v233_v38 }
 0x238   :  { %337 = vmatmul.mubr.f32.vlgmr.msra.gmra.mxu1 %v231_v36 }
 0x239   :  { %v222_v41 = vpop.permute.xlu1 %221 }
 0x23a   :  { %v234_v42 = vsel %vm225_vm1, %v190_v39, %v222_v41 }
 0x23b   :  { %498 = vmatprep.mubr.msk.f32.mxu1 %vm56_vm0, %v234_v42 }
 0x23c   :  { %342 = vmatmul.mubr.f32.gmra.mxu1 %v232_v43 }
 0x2f8   :  { %v338_v55 = vpop.f32.mrf.mxu1 }
 0x2f9   :  { %v339_v56 = vadd.f32 %v496_v54, %v338_v55 }
 0x2fa   :  { %v340_v57 = vpop.f32.mrf.mxu1 }
 0x2fb   :  { %621 = vtanh.f32 %v339_v56 }
 0x2fc   :  { %v343_v58 = vpop.f32.mrf.mxu1 }
 0x2fd   :  { %v344_v59 = vadd.f32 %v496_v54, %v343_v58 }
 0x2fe   :  { %v345_v60 = vpop.f32.mrf.mxu1 }
 0x2ff   :  { %623 = vtanh.f32 %v344_v59 }
 0x308   :  { %v622_v61 = vpop.eup %621 }
 0x309   :  { %595 = vmatprep.mubr.msk.f32.mxu0 %vm230_vm2, %v622_v61 }
 0x30c   :  { %v624_v62 = vpop.eup %623 }
 0x30d   :  { %596 = vmatmul.mubr.msk.f32.vlgmr.msra.gmra.mxu0 %vm230_vm2, %v624_v62 }
 0x3cd   :  { %v597_v0 = vpop.f32.mrf.mxu0 }
 0x3ce   :  { %v446_v1 = vadd.f32 %v597_v0, %v499_v63 }
 0x3cf   :  { %v440_v2 = vpop.f32.mrf.mxu0 }
 0x3d0   :  { %625 = vtanh.f32 %v446_v1  ;;  %v441_v3 = vadd.f32 %v499_v63, %v440_v2 }
 0x3d2   :  { %627 = vtanh.f32 %v441_v3 }
 0x3dd   :  { %v626_v4 = vpop.eup %625 }
 0x3de   :  { %v453_v5 = vmul.f32 1.442695, %v626_v4 }
 0x3df   :  { %v628_v6 = vpop.eup %627 }
 0x3e0   :  { %629 = vpow2.f32 %v453_v5  ;;  %v451_v7 = vmul.f32 1.442695, %v628_v6 }
 0x3e2   :  { %631 = vpow2.f32 %v451_v7 }
 0x3ed   :  { %v630_v8 = vpop.eup %629 }
 0x3ee   :  { %v459_v11 = vsel %vm455_vm3, %v630_v8, 0.0  ;;  %v465_v15 = vmul.f32 %v630_v8, %v463_v10 }
 0x3ef   :  { %v632_v12 = vpop.eup %631  ;;  %460 = vadd.xlane.f32.xlu0 %v459_v11 }
 0x3f0   :  { %v456_v13 = vsel %vm455_vm3, %v632_v12, 0.0  ;;  %v464_v14 = vmul.f32 %v632_v12, %v462_v9  ;;  %v469_v17 = vsel %vm455_vm3, %v465_v15, 0.0 }
 0x3f1   :  { %457 = vadd.xlane.f32.xlu1 %v456_v13 }
 0x3f2   :  { %v466_v16 = vsel %vm455_vm3, %v464_v14, 0.0 }
 0x3f3   :  { %467 = vadd.xlane.f32.xlu0 %v466_v16 }
 0x3f5   :  { %470 = vadd.xlane.f32.xlu1 %v469_v17 }
 0x478   :  { %v461_v18 = vpop.xlane.xlu0 %460 }
 0x479   :  { %633 = vrcp.f32 %v461_v18 }
 0x47a   :  { %v458_v19 = vpop.xlane.xlu1 %457 }
 0x47b   :  { %635 = vrcp.f32 %v458_v19 }
 0x47c   :  { %v468_v24 = vpop.xlane.xlu0 %467 }
 0x47e   :  { %v471_v21 = vpop.xlane.xlu1 %470 }
 0x486   :  { %v634_v20 = vpop.eup %633 }
 0x487   :  { %v475_v22 = vmul.f32 %v634_v20, %v471_v21 }
 0x488   :  { %v636_v23 = vpop.eup %635 }
 0x489   :  { %v474_v25 = vmul.f32 %v636_v23, %v468_v24  ;;  %v503_v26 = vmul.f32 -1.442695, %v475_v22 }
 0x48b   :  { %v502_v27 = vmul.f32 -1.442695, %v474_v25  ;;  %637 = vpow2.f32 %v503_v26 }
 0x48d   :  { %639 = vpow2.f32 %v502_v27 }
 0x498   :  { %v638_v28 = vpop.eup %637 }
 0x499   :  { %v483_v29 = vadd.f32 1.0, %v638_v28 }
 0x49a   :  { %v640_v30 = vpop.eup %639 }
 0x49b   :  { %v482_v31 = vadd.f32 1.0, %v640_v30  ;;  %641 = vrcp.f32 %v483_v29 }
 0x49d   :  { %643 = vrcp.f32 %v482_v31 }
 0x4a8   :  { %v642_v32 = vpop.eup %641 }
 0x4a9   :  { %490 = vst.msk [vmem:[%s1008_s13 + $0x8] sm:$0xff] %vm488_vm4, %v642_v32 }
 0x4aa   :  { %v644_v33 = vpop.eup %643 }
 0x4ab   :  { %489 = vst.msk [vmem:[%s1008_s13] sm:$0xff] %vm488_vm4, %v644_v33 }

</bundles_post_ra>
